<compile_context>
chip_gen: v5e
topology: v5e:2x2
jax: 0.10.0
libtpu: 0.0.40
codegen_flags: <defaults>
</compile_context>

<pallas_src>
import jax
import jax.numpy as jnp
from jax.experimental import pallas as pl
from jax.experimental.pallas import tpu as pltpu


_TARGET_BLOCK_BYTES = 4 * 1024 * 1024    # ~4 MiB blocks: mem-bound sweet spot
_VMEM_LIMIT_BYTES = 32 * 1024 * 1024     # 2 arrays x 2 bufs x 4 MiB = 16 MiB live
_MIN_PALLAS_ELEMENTS = 1 << 18           # below ~1 MiB f32, let XLA fuse x*x


def _square_kernel(x_ref, o_ref):
    # Elementwise square on the whole VMEM tile (one VPU multiply per vreg).
    x = x_ref[...]
    o_ref[...] = x * x


def _round_up(n: int, m: int) -> int:
    return ((n + m - 1) // m) * m


def _sublane_multiple(dtype) -> int:
    # Sub-32-bit dtypes pack along sublanes: keep row tiles aligned so every
    # vst is unmasked.
    itemsize = jnp.dtype(dtype).itemsize
    if itemsize >= 4:
        return 8
    if itemsize == 2:
        return 16
    return 32


def _pick_lane(total: int) -> int:
    # Largest lane width (multiple of 128) that divides the element count.
    for lane in (512, 256, 128):
        if total % lane == 0:
            return lane
    return 0


def _square_pallas_2d(x2d: jax.Array) -> jax.Array:
    rows, lane = x2d.shape
    dtype = x2d.dtype
    itemsize = jnp.dtype(dtype).itemsize
    sub = _sublane_multiple(dtype)

    # Largest row tile that keeps one block <= ~4 MiB (dtype-aware).
    max_tr = max(sub, (_TARGET_BLOCK_BYTES // (lane * itemsize)) // sub * sub)
    # Keep >= 2 grid steps on anything non-trivial so v7x's two TensorCores
    # both get work; tiny inputs collapse to a single full-array block.
    tr = min(max_tr, _round_up(pl.cdiv(rows, 2), sub))
    if tr >= rows:
        tr = rows  # single block == full array extent (always a legal block shape)

    grid = (pl.cdiv(rows, tr),)  # final partial block: masked writes, no padding

    return pl.pallas_call(
        _square_kernel,
        out_shape=jax.ShapeDtypeStruct((rows, lane), dtype),
        grid=grid,
        in_specs=[pl.BlockSpec((tr, lane), lambda i: (i, 0))],
        out_specs=pl.BlockSpec((tr, lane), lambda i: (i, 0)),
        input_output_aliases={0: 0},
        compiler_params=pltpu.CompilerParams(
            dimension_semantics=("parallel",),
            vmem_limit_bytes=_VMEM_LIMIT_BYTES,
        ),
    )(x2d)


def square_layer(x: jax.Array, *, min_pallas_elements: int = _MIN_PALLAS_ELEMENTS) -> jax.Array:
    """Pallas equivalent of SquareLayer.forward: returns x ** 2 (same shape/dtype)."""
    total = x.size
    if total == 0:
        return x

    lane = _pick_lane(total)
    if lane == 0 or total < min_pallas_elements:
        # Tiny or lane-unaligned tensors: a fused elementwise square is cheaper
        # than a standalone pallas_call (and avoids any pad/slice HBM traffic).
        return x * x

    x2d = x.reshape(total // lane, lane)        # pure view change, no pad
    return _square_pallas_2d(x2d).reshape(x.shape)


if __name__ == "__main__":
    key = jax.random.PRNGKey(0)
    # SCCNet-style NCHW activation; H*W = 256 is already lane-aligned, so the
    # Pallas path needs no padding and no output slice.
    x = jax.random.normal(key, (2, 4, 16, 16), dtype=jnp.float32)

    # Force the Pallas path even though this test tensor is tiny.
    y = jax.block_until_ready(square_layer(x, min_pallas_elements=0))
    assert y.shape == x.shape and y.dtype == x.dtype
    assert jnp.array_equal(y, x * x)

    # Default path on a tiny tensor takes the fused fallback.
    y_small = jax.block_until_ready(square_layer(x))
    assert jnp.array_equal(y_small, x * x)

    # A modestly larger bf16 tensor with a non-multiple-of-8 row count
    # exercises the masked partial final block and the 2-step grid.
    x2 = jax.random.normal(jax.random.PRNGKey(1), (3, 5, 59, 128), dtype=jnp.bfloat16)
    y2 = jax.block_until_ready(square_layer(x2, min_pallas_elements=0))
    assert y2.shape == x2.shape and y2.dtype == x2.dtype
    assert jnp.array_equal(y2, x2 * x2)

    print("KERNEL_OK")
</pallas_src>

<mosaic_0001>
module attributes {stable_mosaic.version = 11 : i64} {
  func.func @_square_kernel(%arg0: i32, %arg1: memref<4x512xf32, #tpu.memory_space<vmem>>, %arg2: memref<4x512xf32, #tpu.memory_space<vmem>>) attributes {dimension_semantics = [#tpu.dimension_semantics<parallel>], iteration_bounds = array<i64: 1>, scalar_prefetch = 0 : i64, scratch_operands = 0 : i64, tpu.core_type = #tpu.core_type<tc>, window_params = [{transform_indices = @transform_0, window_bounds = array<i64: 4, 512>}, {transform_indices = @transform_1, window_bounds = array<i64: 4, 512>}]} {
    %c0 = arith.constant 0 : index
    %c0_0 = arith.constant 0 : index
    %0 = vector.load %arg1[%c0, %c0_0] : memref<4x512xf32, #tpu.memory_space<vmem>>, vector<4x512xf32>
    %1 = arith.mulf %0, %0 : vector<4x512xf32>
    %c0_1 = arith.constant 0 : index
    %c0_2 = arith.constant 0 : index
    %2 = vector.load %arg2[%c0_1, %c0_2] : memref<4x512xf32, #tpu.memory_space<vmem>>, vector<4x512xf32>
    tpu.vector_store %arg2[%c0_1, %c0_2], %1 {strides = array<i32>} : memref<4x512xf32, #tpu.memory_space<vmem>>, vector<4x512xf32>,
    return
  }
  func.func @transform_0(%arg0: i32) -> (i32, i32) {
    %c0_i32 = arith.constant 0 : i32
    %c0_i32_0 = arith.constant 0 : i32
    return %arg0, %c0_i32 : i32, i32
  }
  func.func @transform_1(%arg0: i32) -> (i32, i32) {
    %c0_i32 = arith.constant 0 : i32
    %c0_i32_0 = arith.constant 0 : i32
    return %arg0, %c0_i32 : i32, i32
  }
}

</mosaic_0001>

<bundles_post_ra>
// kernel: tpu_custom_call.1
= control target key start
LH: loop header
LB: loop body
LE: loop exit
PB: predicated region body
PF: predicated region fallthrough
CT: control target
= control target key end

     0   :  { %6 = vsyncpa [#allocation3], 0  ;;  %s118_s0 = inlined_call_operand.hbm [shape: f32[4,512], index: 0, kind: input, shape index: {}, may-alias: {0,1}]   ;;  %s119_s1 = inlined_call_operand.hbm [shape: f32[4,512], index: 1, kind: output, shape index: {}, may-alias: {0,1}]  }
   0x1   :  { %7 = vsyncpa [#allocation4], 0  ;;  %s13_s8 = sshll.u32 %s118_s0, 4  ;;  %s100_s9 = smov [#allocation2]   ;;  %s14_s8 = int_to_ptr.hbm [resolvable:$true] %s13_s8 }
   0x2   :  { %s15_s10 = sshll.u32 %s100_s9, 4  ;;  %s16_s10 = int_to_ptr.vmem [resolvable:$true] %s15_s10 }
   0x3   :  { %18 = dma.hbm_to_vmem [thread:$0]  %s14_s8, 256, %s16_s10, [#allocation3]  }
   0x4   :  { %96 = dma.done.wait [#allocation3], 256  }
   0x5   :  { %97 = vsyncadd [#allocation3], 4294967040  ;;  %s101_s11 = smov [#allocation5]   ;;  %s36_s15 = sshll.u32 %s119_s1, 4  ;;  %v23_v0 = vld [vmem:[#allocation2] sm:$0xff]  ;;  %v24_v1 = vld [vmem:[#allocation2 + $0x8] sm:$0xff]  ;;  %s37_s15 = int_to_ptr.hbm [resolvable:$true] %s36_s15 }
   0x6   :  { %s34_s12 = sshll.u32 %s101_s11, 4  ;;  %v25_v2 = vmul.f32 %v23_v0, %v23_v0  ;;  %v26_v3 = vmul.f32 %v24_v1, %v24_v1  ;;  %s35_s12 = int_to_ptr.vmem [resolvable:$true] %s34_s12 }
   0x8   :  { %27 = vst [vmem:[#allocation5] sm:$0xff] %v25_v2 }
   0x9   :  { %28 = vst [vmem:[#allocation5 + $0x8] sm:$0xff] %v26_v3 }
   0xa   :  { %39 = dma.vmem_to_hbm [thread:$0]  %s35_s12, 256, %s37_s15, [#allocation4]  }
   0xb   :  { %98 = dma.done.wait [#allocation4], 256  }
   0xc   :  { %99 = vsyncadd [#allocation4], 4294967040 }
   0xd   :  { %44 = vsyncpa [#allocation3], 1 }
   0xe   :  { %45 = vsyncpa [#allocation4], 1 }

</bundles_post_ra>
